<compile_context>
chip_gen: v7x
topology: tpu7x:2x2x1
jax: 0.10.0
libtpu: 0.0.40
codegen_flags: <defaults>
</compile_context>

<pallas_src>
import math
import functools

import jax
import jax.numpy as jnp
from jax.experimental import pallas as pl
from jax.experimental.pallas import tpu as pltpu


# ------------------------------- small helpers -------------------------------
def _round_up(a, b):
    return ((a + b - 1) // b) * b


def _cdiv(a, b):
    return (a + b - 1) // b


def _itemsize(dt):
    return jnp.dtype(dt).itemsize


_VMEM_STEP_BUDGET = 36 * (1 << 20)   # target for the double-buffered per-step working set


def _pick_tile_l(L, tile_l):
    """Output tile width along L and number of L tiles (ragged last tile allowed)."""
    if L < 256:
        return L, 1                              # single full-extent block (always legal)
    # Split into >=2 tiles of a 128-multiple so both TensorCores of a megacore (v7x)
    # get work even when the batch axis provides no parallelism.
    half = _round_up((L + 1) // 2, 128)
    tl = min(tile_l, half)
    return tl, _cdiv(L, tl)


def _fit_bn(bn, step_bytes_fn, budget=_VMEM_STEP_BUDGET):
    while bn > 1 and step_bytes_fn(bn) > budget:
        bn = max(1, bn // 2)
    return bn


def _vmem_limit_bytes(step_bytes):
    # Explicit scoped-VMEM limit: large enough for the double-buffered pipeline plus
    # Mosaic-internal scratch, but below v7x's 64 MiB physical VMEM.
    return int(min(56 * (1 << 20), max(32 * (1 << 20), step_bytes + (8 << 20))))


# --------------------------------- kernels -----------------------------------
def _conv1x1_kernel(x_ref, w_ref, o_ref, *, relu, compute_dtype):
    # x_ref: (bn, C_in, tl)   w_ref: (C_out, C_in)   o_ref: (bn, C_out, tl)
    bn = o_ref.shape[0]
    w = w_ref[...]
    for b in range(bn):                      # static unroll; bn is small
        x = x_ref[b]
        if compute_dtype is not None:
            x = x.astype(compute_dtype)      # in-kernel cast: hidden under the DMA
        acc = jnp.dot(w, x, preferred_element_type=jnp.float32)
        if relu:
            acc = jnp.maximum(acc, 0.0)
        o_ref[b] = acc.astype(o_ref.dtype)


def _convk_halo_kernel(x_ref, h_ref, w_ref, o_ref, *, K, relu, compute_dtype):
    # x_ref: (bn, C_in, xw) main window   h_ref: (bn, C_in, hw) right halo
    # w_ref: (K, C_out, C_in)             o_ref: (bn, C_out, tl)      (xw >= tl)
    bn, _, tl = o_ref.shape
    w = w_ref[...]
    if compute_dtype is not None:
        w = w.astype(compute_dtype)
    for b in range(bn):                      # static unroll
        xcat = jnp.concatenate([x_ref[b], h_ref[b, :, :K - 1]], axis=-1)
        if compute_dtype is not None:
            xcat = xcat.astype(compute_dtype)
        acc = jnp.dot(w[0], xcat[:, 0:tl], preferred_element_type=jnp.float32)
        for k in range(1, K):                # static unroll over taps, f32 accumulate
            acc = acc + jnp.dot(w[k], xcat[:, k:k + tl],
                                preferred_element_type=jnp.float32)
        if relu:
            acc = jnp.maximum(acc, 0.0)
        o_ref[b] = acc.astype(o_ref.dtype)


def _convk_stacked_kernel(x_ref, w_ref, o_ref, acc_ref, *, relu, compute_dtype):
    # Fallback (stride > 1): x_ref: (1, bn, C_in, tl) block of (K, N, C_in, L_out)
    # w_ref: (1, C_out, C_in) block of (K, C_out, C_in)
    # o_ref: (bn, C_out, tl)  acc_ref: (bn, C_out, tl) f32 scratch
    k = pl.program_id(2)
    bn = o_ref.shape[0]

    @pl.when(k == 0)
    def _():
        acc_ref[...] = jnp.zeros_like(acc_ref)

    w = w_ref[0]
    for b in range(bn):
        x = x_ref[0, b]
        if compute_dtype is not None:
            x = x.astype(compute_dtype)
        acc_ref[b] += jnp.dot(w, x, preferred_element_type=jnp.float32)

    @pl.when(k == pl.num_programs(2) - 1)
    def _():
        out = acc_ref[...]
        if relu:
            out = jnp.maximum(out, 0.0)
        o_ref[...] = out.astype(o_ref.dtype)


# --------------------------------- wrappers -----------------------------------
def _conv1x1_pallas(xs, w2d, relu, tile_l, bn_max, compute_dtype=None, out_dtype=None):
    # xs: (N, C_in, L)   w2d: (C_out, C_in)
    N, C_in, L = xs.shape
    C_out = w2d.shape[0]
    out_dtype = out_dtype if out_dtype is not None else xs.dtype
    if compute_dtype is not None:
        w2d = w2d.astype(compute_dtype)      # weights are tiny; activations cast in-kernel

    tl, grid_l = _pick_tile_l(L, tile_l)
    xb, wb, ob = _itemsize(xs.dtype), _itemsize(w2d.dtype), _itemsize(out_dtype)

    def step_bytes(bn):
        return 2 * (bn * C_in * tl * xb + C_out * C_in * wb + bn * C_out * tl * ob)

    bn = _fit_bn(max(1, min(bn_max, N)), step_bytes)
    grid_n = _cdiv(N, bn)

    cost = pl.CostEstimate(
        flops=int(2 * N * L * C_in * C_out), transcendentals=0,
        bytes_accessed=int(xs.size * xb + w2d.size * wb + N * C_out * L * ob))

    kernel = functools.partial(_conv1x1_kernel, relu=relu, compute_dtype=compute_dtype)
    return pl.pallas_call(
        kernel,
        out_shape=jax.ShapeDtypeStruct((N, C_out, L), out_dtype),
        grid=(grid_n, grid_l),
        in_specs=[
            pl.BlockSpec((bn, C_in, tl), lambda n, j: (n, 0, j)),
            pl.BlockSpec((C_out, C_in), lambda n, j: (0, 0)),
        ],
        out_specs=pl.BlockSpec((bn, C_out, tl), lambda n, j: (n, 0, j)),
        compiler_params=pltpu.CompilerParams(
            dimension_semantics=("parallel", "parallel"),
            vmem_limit_bytes=_vmem_limit_bytes(step_bytes(bn))),
        cost_estimate=cost,
    )(xs, w2d)


def _convk_halo_pallas(xs, wk, relu, tile_l, bn_max, compute_dtype=None, out_dtype=None):
    # stride==1 path.  xs: (N, C_in, Lp) conv-padded input, wk: (K, C_out, C_in).
    N, C_in, Lp = xs.shape
    K, C_out, _ = wk.shape
    L_out = Lp - K + 1
    out_dtype = out_dtype if out_dtype is not None else xs.dtype
    if compute_dtype is not None:
        wk = wk.astype(compute_dtype)

    tl, grid_l = _pick_tile_l(L_out, tile_l)
    if grid_l == 1:
        # Single tile: full-extent input window already contains the whole receptive
        # field; the halo operand is a (legal) dummy and is never read by valid outputs.
        xw = Lp
        hw = 128 if Lp >= 128 else Lp
        halo_map = lambda n, j: (n, 0, 0)
    else:
        # Multi tile: main block of width tl plus the first K-1 lanes of a 128-lane
        # halo block starting at (j+1)*tl (clamped to the last valid 128-block; when
        # clamping happens no valid output needs the halo).
        xw = tl
        hw = 128
        n_hblk = _cdiv(Lp, hw)
        ratio = tl // hw
        halo_map = lambda n, j: (n, 0, jnp.minimum((j + 1) * ratio, n_hblk - 1))

    xb, wb, ob = _itemsize(xs.dtype), _itemsize(wk.dtype), _itemsize(out_dtype)

    def step_bytes(bn):
        return 2 * (bn * C_in * (xw + hw) * xb + K * C_out * C_in * wb
                    + bn * C_out * tl * ob)

    bn = _fit_bn(max(1, min(bn_max, N)), step_bytes)
    grid_n = _cdiv(N, bn)

    cost = pl.CostEstimate(
        flops=int(2 * K * N * L_out * C_in * C_out), transcendentals=0,
        bytes_accessed=int(xs.size * xb + grid_l * N * C_in * hw * xb
                           + wk.size * wb + N * C_out * L_out * ob))

    kernel = functools.partial(_convk_halo_kernel, K=K, relu=relu,
                               compute_dtype=compute_dtype)
    return pl.pallas_call(
        kernel,
        out_shape=jax.ShapeDtypeStruct((N, C_out, L_out), out_dtype),
        grid=(grid_n, grid_l),
        in_specs=[
            pl.BlockSpec((bn, C_in, xw), lambda n, j: (n, 0, j)),
            pl.BlockSpec((bn, C_in, hw), halo_map),
            pl.BlockSpec((K, C_out, C_in), lambda n, j: (0, 0, 0)),
        ],
        out_specs=pl.BlockSpec((bn, C_out, tl), lambda n, j: (n, 0, j)),
        compiler_params=pltpu.CompilerParams(
            dimension_semantics=("parallel", "parallel"),
            vmem_limit_bytes=_vmem_limit_bytes(step_bytes(bn))),
        cost_estimate=cost,
    )(xs, xs, wk)


def _convk_stacked_pallas(xk, wk, relu, tile_l, bn_max, compute_dtype=None,
                          out_dtype=None):
    # Fallback for stride>1: xk: (K, N, C_in, L_out) pre-shifted strided taps.
    K, N, C_in, L_out = xk.shape
    C_out = wk.shape[1]
    out_dtype = out_dtype if out_dtype is not None else xk.dtype
    if compute_dtype is not None:
        wk = wk.astype(compute_dtype)

    tl, grid_l = _pick_tile_l(L_out, tile_l)
    xb, wb, ob = _itemsize(xk.dtype), _itemsize(wk.dtype), _itemsize(out_dtype)

    def step_bytes(bn):
        return (2 * (bn * C_in * tl * xb + C_out * C_in * wb + bn * C_out * tl * ob)
                + bn * C_out * tl * 4)       # f32 accumulator scratch

    bn = _fit_bn(max(1, min(bn_max, N)), step_bytes)
    grid_n = _cdiv(N, bn)

    cost = pl.CostEstimate(
        flops=int(2 * K * N * L_out * C_in * C_out), transcendentals=0,
        bytes_accessed=int(xk.size * xb + wk.size * wb + N * C_out * L_out * ob))

    kernel = functools.partial(_convk_stacked_kernel, relu=relu,
                               compute_dtype=compute_dtype)
    return pl.pallas_call(
        kernel,
        out_shape=jax.ShapeDtypeStruct((N, C_out, L_out), out_dtype),
        grid=(grid_n, grid_l, K),
        in_specs=[
            pl.BlockSpec((1, bn, C_in, tl), lambda n, j, k: (k, n, 0, j)),
            pl.BlockSpec((1, C_out, C_in), lambda n, j, k: (k, 0, 0)),
        ],
        out_specs=pl.BlockSpec((bn, C_out, tl), lambda n, j, k: (n, 0, j)),
        scratch_shapes=[pltpu.VMEM((bn, C_out, tl), jnp.float32)],
        compiler_params=pltpu.CompilerParams(
            dimension_semantics=("parallel", "parallel", "arbitrary"),
            vmem_limit_bytes=_vmem_limit_bytes(step_bytes(bn))),
        cost_estimate=cost,
    )(xk, wk)


# ------------------------------- module port ---------------------------------
class InitializedConv1d:
    """JAX/Pallas port of QANet Initialized_Conv1d (groups=1, bias=False)."""

    def __init__(self, in_channels, out_channels, kernel_size=1, stride=1,
                 padding=0, groups=1, relu=False, bias=False, key=None,
                 tile_l=1024, bn=8, compute_dtype=None):
        assert groups == 1, "groups != 1 not supported"
        assert not bias, "bias=True not supported (module default is bias=False)"
        # TODO(synk): groups>1 / bias=True paths not implemented (module defaults used).
        assert tile_l % 128 == 0, "tile_l must be a multiple of 128 lanes"
        assert kernel_size >= 1 and stride >= 1

        self.in_channels = in_channels
        self.out_channels = out_channels
        self.kernel_size = kernel_size
        self.stride = stride
        self.padding = padding
        self.relu = relu
        self.tile_l = tile_l
        self.bn = bn
        self.compute_dtype = compute_dtype  # e.g. jnp.bfloat16 for v6e/v7x MXU rate

        if key is None:
            key = jax.random.PRNGKey(0)
        fan_in = in_channels * kernel_size
        fan_out = out_channels * kernel_size
        if relu:
            # kaiming_normal_(nonlinearity='relu'): std = sqrt(2 / fan_in)
            std = math.sqrt(2.0 / fan_in)
            self.weight = std * jax.random.normal(
                key, (out_channels, in_channels, kernel_size), dtype=jnp.float32)
        else:
            # xavier_uniform_: bound = sqrt(6 / (fan_in + fan_out))
            bound = math.sqrt(6.0 / (fan_in + fan_out))
            self.weight = jax.random.uniform(
                key, (out_channels, in_channels, kernel_size),
                minval=-bound, maxval=bound, dtype=jnp.float32)

    def __call__(self, x):
        # x: (N, C_in, L)  ->  (N, C_out, L_out)   (PyTorch NCW layout)
        N, C_in, L = x.shape
        assert C_in == self.in_channels
        K, S, P = self.kernel_size, self.stride, self.padding
        L_out = (L + 2 * P - K) // S + 1
        assert L_out >= 1, "output length must be positive"
        span = (L_out - 1) * S + 1        # exact input extent per tap (stride-safe)

        if K == 1:
            if S == 1 and P == 0:
                xs = x                                      # no copy, no transpose
            else:
                x_pad = jnp.pad(x, ((0, 0), (0, 0), (P, P))) if P > 0 else x
                xs = jax.lax.slice_in_dim(x_pad, 0, span, stride=S, axis=2)
            return _conv1x1_pallas(xs, self.weight[:, :, 0], self.relu,
                                   self.tile_l, self.bn,
                                   compute_dtype=self.compute_dtype,
                                   out_dtype=x.dtype)

        wk = jnp.transpose(self.weight, (2, 0, 1))          # (K, C_out, C_in)

        if S == 1 and K <= 64:
            # Halo path: x is read (roughly) once; taps accumulate in-kernel.
            xs = jnp.pad(x, ((0, 0), (0, 0), (P, P))) if P > 0 else x
            return _convk_halo_pallas(xs, wk, self.relu, self.tile_l, self.bn,
                                      compute_dtype=self.compute_dtype,
                                      out_dtype=x.dtype)

        # TODO(synk): stride>1 with K>1 (rare) still pre-gathers K strided taps of x.
        x_pad = jnp.pad(x, ((0, 0), (0, 0), (P, P))) if P > 0 else x
        xk = jnp.stack([jax.lax.slice_in_dim(x_pad, k, k + span, stride=S, axis=2)
                        for k in range(K)], axis=0)         # (K, N, C_in, L_out)
        return _convk_stacked_pallas(xk, wk, self.relu, self.tile_l, self.bn,
                                     compute_dtype=self.compute_dtype,
                                     out_dtype=x.dtype)


# ----------------------------------- demo ------------------------------------
if __name__ == "__main__":
    key = jax.random.PRNGKey(0)
    k_x, k_x2, k_w1, k_w2, k_w3, k_w4 = jax.random.split(key, 6)

    N, C_in, C_out, L = 2, 4, 8, 16
    x = jax.random.normal(k_x, (N, C_in, L), dtype=jnp.float32)
    L2 = 1100
    x2 = jax.random.normal(k_x2, (N, C_in, L2), dtype=jnp.float32)

    def conv1d_ref(xf, w, stride=1, padding=0, relu=False):
        Kk = w.shape[-1]
        xp = jnp.pad(xf, ((0, 0), (0, 0), (padding, padding))) if padding > 0 else xf
        Lp = xp.shape[-1]
        Lo = (Lp - Kk) // stride + 1
        sp = (Lo - 1) * stride + 1
        out = jnp.zeros((xf.shape[0], w.shape[0], Lo), jnp.float32)
        for k in range(Kk):
            xs = jax.lax.slice_in_dim(xp, k, k + sp, stride=stride, axis=2)
            out = out + jnp.einsum("oc,ncl->nol", w[:, :, k], xs, precision="highest")
        return jnp.maximum(out, 0.0) if relu else out

    def check(got, want, atol=1e-4, rtol=1e-4):
        assert got.shape == want.shape, (got.shape, want.shape)
        assert jnp.allclose(got, want, atol=atol, rtol=rtol), \
            float(jnp.max(jnp.abs(got - want)))

    # 1) K=1, relu=True (kaiming init) -- lane-dense 1x1 hot path.
    conv_relu = InitializedConv1d(C_in, C_out, kernel_size=1, relu=True, key=k_w1)
    y = conv_relu(x)
    jax.block_until_ready(y)
    check(y, conv1d_ref(x, conv_relu.weight, relu=True))

    # 2) K=1, relu=False (xavier init).
    conv_lin = InitializedConv1d(C_in, C_out, kernel_size=1, relu=False, key=k_w2)
    y = conv_lin(x)
    jax.block_until_ready(y)
    check(y, conv1d_ref(x, conv_lin.weight))

    # 3) K=1, long sequence: tiled grid over L with ragged last block (no pad/slice).
    y = conv_lin(x2)
    jax.block_until_ready(y)
    check(y, conv1d_ref(x2, conv_lin.weight))

    # 4) K=3, stride=1, padding=1: halo path, single-tile regime.
    conv_k3 = InitializedConv1d(C_in, C_out, kernel_size=3, stride=1, padding=1,
                                relu=True, key=k_w3)
    y = conv_k3(x)
    jax.block_until_ready(y)
    check(y, conv1d_ref(x, conv_k3.weight, padding=1, relu=True))

    # 5) K=3, stride=1, padding=1, long sequence: halo path, multi-tile + ragged.
    y = conv_k3(x2)
    jax.block_until_ready(y)
    check(y, conv1d_ref(x2, conv_k3.weight, padding=1, relu=True))

    # 6) K=3, stride=2, padding=1: stacked fallback path.
    conv_s2 = InitializedConv1d(C_in, C_out, kernel_size=3, stride=2, padding=1,
                                relu=True, key=k_w4)
    y = conv_s2(x)
    jax.block_until_ready(y)
    check(y, conv1d_ref(x, conv_s2.weight, stride=2, padding=1, relu=True))

    # 7) bf16 compute mode (f32 accumulate, in-kernel cast), loose tolerance.
    conv_bf16 = InitializedConv1d(C_in, C_out, kernel_size=1, relu=False, key=k_w2,
                                  compute_dtype=jnp.bfloat16)
    y = conv_bf16(x)
    jax.block_until_ready(y)
    assert y.dtype == jnp.float32
    check(y, conv1d_ref(x, conv_lin.weight), atol=5e-2, rtol=5e-2)

    print("KERNEL_OK")
</pallas_src>

<mosaic_0001>
module attributes {stable_mosaic.version = 11 : i64} {
  func.func @_conv1x1_kernel(%arg0: i32, %arg1: i32, %arg2: memref<2x4x16xf32, #tpu.memory_space<vmem>>, %arg3: memref<8x4xf32, #tpu.memory_space<vmem>>, %arg4: memref<2x8x16xf32, #tpu.memory_space<vmem>>) attributes {dimension_semantics = [#tpu.dimension_semantics<parallel>, #tpu.dimension_semantics<parallel>], iteration_bounds = array<i64: 1, 1>, scalar_prefetch = 0 : i64, scratch_operands = 0 : i64, tpu.core_type = #tpu.core_type<tc>, window_params = [{transform_indices = @transform_0, window_bounds = array<i64: 2, 4, 16>}, {pipeline_mode = #tpu.pipeline_mode<synchronous>, transform_indices = @transform_1, window_bounds = array<i64: 8, 4>}, {transform_indices = @transform_2, window_bounds = array<i64: 2, 8, 16>}]} {
    %c0 = arith.constant 0 : index
    %c0_0 = arith.constant 0 : index
    %0 = vector.load %arg3[%c0, %c0_0] : memref<8x4xf32, #tpu.memory_space<vmem>>, vector<8x4xf32>
    %c0_1 = arith.constant 0 : index
    %c0_2 = arith.constant 0 : index
    %c0_3 = arith.constant 0 : index
    %1 = vector.load %arg2[%c0_1, %c0_2, %c0_3] : memref<2x4x16xf32, #tpu.memory_space<vmem>>, vector<1x4x16xf32>
    %2 = vector.shape_cast %1 : vector<1x4x16xf32> to vector<4x16xf32>
    %cst = arith.constant dense<0.000000e+00> : vector<8x16xf32>
    %3 = tpu.matmul %0, %2, %cst {dimension_numbers = #tpu.dot_dimension_numbers<[1], [0], [0], [1], [0, 0, 1, 1], [], []>} : vector<8x4xf32>, vector<4x16xf32>, vector<8x16xf32> -> vector<8x16xf32>
    %cst_4 = arith.constant 0.000000e+00 : f32
    %4 = vector.broadcast %cst_4 : f32 to vector<8x16xf32>
    %5 = arith.maximumf %3, %4 : vector<8x16xf32>
    %c0_5 = arith.constant 0 : index
    %c0_6 = arith.constant 0 : index
    %c0_7 = arith.constant 0 : index
    %6 = vector.load %arg4[%c0_5, %c0_6, %c0_7] : memref<2x8x16xf32, #tpu.memory_space<vmem>>, vector<1x8x16xf32>
    %7 = vector.shape_cast %6 : vector<1x8x16xf32> to vector<8x16xf32>
    %8 = vector.shape_cast %5 : vector<8x16xf32> to vector<1x8x16xf32>
    tpu.vector_store %arg4[%c0_5, %c0_6, %c0_7], %8 {strides = array<i32>} : memref<2x8x16xf32, #tpu.memory_space<vmem>>, vector<1x8x16xf32>,
    %c1 = arith.constant 1 : index
    %c0_8 = arith.constant 0 : index
    %c0_9 = arith.constant 0 : index
    %9 = vector.load %arg2[%c1, %c0_8, %c0_9] : memref<2x4x16xf32, #tpu.memory_space<vmem>>, vector<1x4x16xf32>
    %10 = vector.shape_cast %9 : vector<1x4x16xf32> to vector<4x16xf32>
    %cst_10 = arith.constant dense<0.000000e+00> : vector<8x16xf32>
    %11 = tpu.matmul %0, %10, %cst_10 {dimension_numbers = #tpu.dot_dimension_numbers<[1], [0], [0], [1], [0, 0, 1, 1], [], []>} : vector<8x4xf32>, vector<4x16xf32>, vector<8x16xf32> -> vector<8x16xf32>
    %cst_11 = arith.constant 0.000000e+00 : f32
    %12 = vector.broadcast %cst_11 : f32 to vector<8x16xf32>
    %13 = arith.maximumf %11, %12 : vector<8x16xf32>
    %c1_12 = arith.constant 1 : index
    %c0_13 = arith.constant 0 : index
    %c0_14 = arith.constant 0 : index
    %14 = vector.load %arg4[%c1_12, %c0_13, %c0_14] : memref<2x8x16xf32, #tpu.memory_space<vmem>>, vector<1x8x16xf32>
    %15 = vector.shape_cast %14 : vector<1x8x16xf32> to vector<8x16xf32>
    %16 = vector.shape_cast %13 : vector<8x16xf32> to vector<1x8x16xf32>
    tpu.vector_store %arg4[%c1_12, %c0_13, %c0_14], %16 {strides = array<i32>} : memref<2x8x16xf32, #tpu.memory_space<vmem>>, vector<1x8x16xf32>,
    return
  }
  func.func @transform_0(%arg0: i32, %arg1: i32) -> (i32, i32, i32) {
    %c0_i32 = arith.constant 0 : i32
    %c0_i32_0 = arith.constant 0 : i32
    return %arg0, %c0_i32, %arg1 : i32, i32, i32
  }
  func.func @transform_1(%arg0: i32, %arg1: i32) -> (i32, i32) {
    %c0_i32 = arith.constant 0 : i32
    %c0_i32_0 = arith.constant 0 : i32
    %c0_i32_1 = arith.constant 0 : i32
    return %c0_i32, %c0_i32_0 : i32, i32
  }
  func.func @transform_2(%arg0: i32, %arg1: i32) -> (i32, i32, i32) {
    %c0_i32 = arith.constant 0 : i32
    %c0_i32_0 = arith.constant 0 : i32
    return %arg0, %c0_i32, %arg1 : i32, i32, i32
  }
}

</mosaic_0001>

<bundles_post_ra>
// kernel: tpu_custom_call.1
= control target key start
LH: loop header
LB: loop body
LE: loop exit
PB: predicated region body
PF: predicated region fallthrough
CT: control target
= control target key end

     0   :  { %vm18_vm0 = vcmask 1043456   ;;  %v237_v1 = vmov 0.0   ;;  %vm14_vm1 = vcmask 31744   ;;  %s278_s0 = inlined_call_operand.vmem [shape: f32[2,4,16], index: 0, kind: input, shape index: {}]   ;;  %s279_s1 = inlined_call_operand.vmem [shape: f32[8,4], index: 1, kind: input, shape index: {}]   ;;  %s280_s2 = inlined_call_operand.hbm [shape: f32[2,8,16], index: 2, kind: output, shape index: {}]  }
   0x1   :  { %v13_v0 = vld [vmem:[%s278_s0] sm:$0xf]  ;;  %198 = vmatprep.subr.mxu0 %v237_v1  ;;  %203 = vmatprep.subr.mxu1 %v237_v1  ;;  %v191_v2 = vld [vmem:[%s278_s0 + $0x4] sm:$0xf] }
   0x2   :  { %v12_v3 = vld [vmem:[%s279_s1] sm:$0xff] }
   0x3   :  { %7 = vsyncpa [#allocation3], 0  ;;  %199 = vmatpush3.msk.msra.mxu0 %vm18_vm0, %v13_v0  ;;  %vm238_vm2 = vmmov 0   ;;  %204 = vmatpush3.msk.msra.mxu1 %vm18_vm0, %v191_v2  ;;  %s239_s15 = smov [#allocation2]   ;;  %vm93_vm3 = vcmask 130048  }
   0x4   :  { %200 = vmatprep.mubr.msk.f32.mxu0 %vm238_vm2, %v237_v1  ;;  %205 = vmatprep.mubr.msk.f32.mxu1 %vm238_vm2, %v237_v1  ;;  %s178_s16 = sshll.u32 %s239_s15, 4  ;;  %s179_s16 = int_to_ptr.vmem [resolvable:$true] %s178_s16 }
   0x5   :  { %201 = vmatmul.mubr.msk.f32.vlgmr.msra.gmra.mrb[0].mxu0 %vm14_vm1, %v12_v3  ;;  %206 = vmatmul.mubr.msk.f32.vlgmr.msra.gmra.mrb[0].mxu1 %vm14_vm1, %v12_v3  ;;  %s213_s0 = scalar_lea.vmem %s179_s16, 256  ;;  %p218_p1 = scmp.lt.s32.totalorder %s179_s16, %s179_s16 }
   0x6   :  { %p214_p0 = scmp.ne.s32.totalorder %s179_s16, %s213_s0  ;;  %p219_p2 = scmp.lt.s32.totalorder %s213_s0, %s213_s0 }
   0x8   :  { %p220_p3 = por %p219_p2, %p218_p1 }
   0xa   :  { %p221_p4 = pnand %p220_p3, %p214_p0 }
  0xd8   :  { %v88_v4 = vpop.f32.mrb[0].mxu0  ;;  %v166_v5 = vpop.f32.mrb[0].mxu1 }
  0xd9   :  { %v92_v6 = vmax.f32 %v88_v4, 0.0  ;;  %v170_v7 = vmax.f32 %v166_v5, 0.0  ;;  %v202_v8 = vpop.f32.mrb[1].mxu0  ;;  %v207_v9 = vpop.f32.mrb[1].mxu1 }
  0xdb   :  { %94 = vst.msk [vmem:[#allocation2] sm:$0xff] %vm93_vm3, %v92_v6  ;;  %172 = vst.msk [vmem:[#allocation2 + $0x8] sm:$0xff] %vm93_vm3, %v170_v7 }
  0xdc   :  { %224 = shalt.err (!%p221_p4)
}
  0xdd   :  { %s225_s18 = scalar_lea.hbm %s280_s2, 256 }
  0xde   :  { %p226_p5 = scmp.ne.s32.totalorder %s280_s2, %s225_s18  ;;  %p229_p6 = scmp.lt.u32.totalorder %s225_s18, %s280_s2 }
  0xe0   :  { %p231_p7 = pnand %p229_p6, %p226_p5 }
  0xe2   :  { %234 = shalt.err (!%p231_p7)
}
  0xe3   :  { %s240_s23 = smov 128   ;;  %s241_s24 = smov 8  }
  0xe4   :  { %184 = dma.vmem_to_hbm [thread:$0]  %s179_s16, 256, %s280_s2, [#allocation3], %s240_s23, %s240_s23, %s241_s24  }
  0xe5   :  { %235 = dma.done.wait [#allocation3], 256  }
  0xe6   :  { %236 = vsyncadd [#allocation3], 4294967040 }
  0xe7   :  { %188 = vsyncpa [#allocation3], 1 }

</bundles_post_ra>
